<compile_context>
chip_gen: v7x
topology: tpu7x:2x2x1
jax: 0.10.0
libtpu: 0.0.40
codegen_flags: <defaults>
</compile_context>

<pallas_src>
import functools
import math

import jax
import jax.numpy as jnp
from jax import lax
from jax.experimental import pallas as pl
from jax.experimental.pallas import tpu as pltpu

NUM_HEADS = 2   # n  (== batch size, forced by torch's .view(n, c, h))
DIM = 32        # c  (feature dim of the Linear layers)
H = 1           # num_query (torch's final .view(batch, num_query, h*c) needs h == 1)


# ------------------------- single fused forward kernel -------------------------
def _fused_attn_kernel(q_ref, k_ref, v_ref, w_ref, b_ref, out_ref, attn_ref,
                       *, n, h, c, scale):
    f32 = jnp.float32

    def project(x_ref, i):
        # torch.nn.Linear: x @ W.T + b   (W stored (out_features, in_features))
        x2 = x_ref[...].reshape(n * h, c).astype(f32)            # (n*h, c)
        w = w_ref[i].astype(f32)                                  # (c, c)
        y = lax.dot_general(x2, w, (((1,), (1,)), ((), ())),
                            preferred_element_type=f32)           # (n*h, c)
        y = y + b_ref[i].astype(f32)                              # (1, c) broadcast
        # torch: .view(n, c, h).transpose(-2, -1)
        if h == 1:                               # pure reshape when h == 1
            return y.reshape(n, h, c)
        return y.reshape(n, c, h).transpose(0, 2, 1)              # general case

    q = project(q_ref, 0)                                         # (n, h, c)
    k = project(k_ref, 1)
    v = project(v_ref, 2)

    # scaled dot-product attention over all heads in one block
    if h == 1:
        # degenerate single-query case: scores are (n,1,1); VPU mul + lane reduce
        s = jnp.sum(q * k, axis=-1, keepdims=True) * scale        # (n, 1, 1)
    else:
        s = jnp.einsum("nqc,nkc->nqk", q, k,
                       preferred_element_type=f32) * scale        # (n, h, h)

    m = jnp.max(s, axis=-1, keepdims=True)
    e = jnp.exp(s - m)
    p = e / jnp.sum(e, axis=-1, keepdims=True)                    # softmax, (n, h, h)
    # TODO(synk): optional mask (masked_fill) and training-mode dropout (p=0.66)
    # are not implemented; this reproduces mask=None / eval-mode semantics.

    if h == 1:
        ctxt = p * v                                              # (n,1,1)*(n,1,c)
    else:
        ctxt = jnp.einsum("nqk,nkc->nqc", p, v,
                          preferred_element_type=f32)             # (n, h, c)

    out_ref[...] = ctxt.reshape(out_ref.shape).astype(out_ref.dtype)
    attn_ref[...] = p.reshape(attn_ref.shape).astype(attn_ref.dtype)


# ------------------------------ module forward ---------------------------------
def attention_forward(params, query, key, value):
    n, c = NUM_HEADS, DIM
    batch_size, num_query = query.shape[0], query.shape[1]
    h = num_query
    assert batch_size == n, "torch's .view(n, c, h) forces batch_size == num_heads"
    assert h == 1, "torch's final .view(batch, num_query, h*c) requires h == 1"

    kern = functools.partial(_fused_attn_kernel, n=n, h=h, c=c,
                             scale=1.0 / math.sqrt(c))
    vmem = lambda: pl.BlockSpec(memory_space=pltpu.MemorySpace.VMEM)
    out, attn = pl.pallas_call(
        kern,
        in_specs=[vmem() for _ in range(5)],
        out_specs=[vmem(), vmem()],
        out_shape=(jax.ShapeDtypeStruct((batch_size, num_query, h * c), query.dtype),
                   jax.ShapeDtypeStruct((n, 1, h, h), query.dtype)),
    )(query, key, value, params["w_qkv"], params["b_qkv"])
    return out, attn


# ----------------------------- pure-JAX reference -------------------------------
def ref_forward(params, query, key, value):
    n, c = NUM_HEADS, DIM
    h = query.shape[1]
    w, b = params["w_qkv"], params["b_qkv"]

    def prep(x, i):
        lin = x.reshape(-1, c) @ w[i].T + b[i]                    # (n*h, c)
        return lin.reshape(n, c, h).swapaxes(-2, -1)[:, None]     # (n, 1, h, c)

    q, k, v = prep(query, 0), prep(key, 1), prep(value, 2)
    s = jnp.einsum("nohc,nokc->nohk", q, k) / math.sqrt(c)
    p = jax.nn.softmax(s, axis=-1)
    ctxt = jnp.einsum("nohk,nokc->nohc", p, v)[:, 0]
    out = ctxt.reshape(query.shape[0], query.shape[1], h * c)
    return out, p


if __name__ == "__main__":
    c = DIM
    ks = jax.random.split(jax.random.PRNGKey(0), 9)
    wq = 0.1 * jax.random.normal(ks[0], (c, c), jnp.float32)
    bq = 0.1 * jax.random.normal(ks[1], (c,), jnp.float32)
    wk = 0.1 * jax.random.normal(ks[2], (c, c), jnp.float32)
    bk = 0.1 * jax.random.normal(ks[3], (c,), jnp.float32)
    wv = 0.1 * jax.random.normal(ks[4], (c, c), jnp.float32)
    bv = 0.1 * jax.random.normal(ks[5], (c,), jnp.float32)
    # Stack QKV params once at init: one weight DMA + one bias DMA per forward.
    params = {
        "w_qkv": jnp.stack([wq, wk, wv]),                 # (3, c, c), torch (out,in) layout
        "b_qkv": jnp.stack([bq, bk, bv])[:, None, :],     # (3, 1, c)
    }
    query  = jax.random.normal(ks[6], (NUM_HEADS, H, c), jnp.float32)
    key_in = jax.random.normal(ks[7], (NUM_HEADS, H, c), jnp.float32)
    value  = jax.random.normal(ks[8], (NUM_HEADS, H, c), jnp.float32)

    out, attn = jax.block_until_ready(attention_forward(params, query, key_in, value))
    ref_out, ref_attn = ref_forward(params, query, key_in, value)
    assert out.shape == (NUM_HEADS, H, H * DIM) and attn.shape == (NUM_HEADS, 1, H, H)
    assert jnp.allclose(out, ref_out, atol=1e-5, rtol=1e-5)
    assert jnp.allclose(attn, ref_attn, atol=1e-5, rtol=1e-5)
    print("KERNEL_OK")
</pallas_src>

<mosaic_0001>
module attributes {stable_mosaic.version = 11 : i64} {
  func.func @_fused_attn_kernel(%arg0: memref<2x1x32xf32, #tpu.memory_space<vmem>>, %arg1: memref<2x1x32xf32, #tpu.memory_space<vmem>>, %arg2: memref<2x1x32xf32, #tpu.memory_space<vmem>>, %arg3: memref<3x32x32xf32, #tpu.memory_space<vmem>>, %arg4: memref<3x1x32xf32, #tpu.memory_space<vmem>>, %arg5: memref<2x1x32xf32, #tpu.memory_space<vmem>>, %arg6: memref<2x1x1x1xf32, #tpu.memory_space<vmem>>) attributes {dimension_semantics = [], scalar_prefetch = 0 : i64, scratch_operands = 0 : i64, tpu.core_type = #tpu.core_type<tc>} {
    %c0 = arith.constant 0 : index
    %c0_0 = arith.constant 0 : index
    %c0_1 = arith.constant 0 : index
    %0 = vector.load %arg0[%c0, %c0_0, %c0_1] : memref<2x1x32xf32, #tpu.memory_space<vmem>>, vector<2x1x32xf32>
    %1 = vector.shape_cast %0 : vector<2x1x32xf32> to vector<2x32xf32>
    %c0_2 = arith.constant 0 : index
    %c0_3 = arith.constant 0 : index
    %c0_4 = arith.constant 0 : index
    %2 = vector.load %arg3[%c0_2, %c0_3, %c0_4] : memref<3x32x32xf32, #tpu.memory_space<vmem>>, vector<1x32x32xf32>
    %3 = vector.shape_cast %2 : vector<1x32x32xf32> to vector<32x32xf32>
    %cst = arith.constant dense<0.000000e+00> : vector<2x32xf32>
    %4 = tpu.matmul %1, %3, %cst {dimension_numbers = #tpu.dot_dimension_numbers<[1], [1], [0], [0], [0, 0, 1, 0], [], []>} : vector<2x32xf32>, vector<32x32xf32>, vector<2x32xf32> -> vector<2x32xf32>
    %c0_5 = arith.constant 0 : index
    %c0_6 = arith.constant 0 : index
    %c0_7 = arith.constant 0 : index
    %5 = vector.load %arg4[%c0_5, %c0_6, %c0_7] : memref<3x1x32xf32, #tpu.memory_space<vmem>>, vector<1x1x32xf32>
    %6 = vector.shape_cast %5 : vector<1x1x32xf32> to vector<1x32xf32>
    %7 = vector.broadcast %6 : vector<1x32xf32> to vector<2x32xf32>
    %8 = arith.addf %4, %7 : vector<2x32xf32>
    %9 = vector.shape_cast %8 : vector<2x32xf32> to vector<2x1x32xf32>
    %c0_8 = arith.constant 0 : index
    %c0_9 = arith.constant 0 : index
    %c0_10 = arith.constant 0 : index
    %10 = vector.load %arg1[%c0_8, %c0_9, %c0_10] : memref<2x1x32xf32, #tpu.memory_space<vmem>>, vector<2x1x32xf32>
    %11 = vector.shape_cast %10 : vector<2x1x32xf32> to vector<2x32xf32>
    %c1 = arith.constant 1 : index
    %c0_11 = arith.constant 0 : index
    %c0_12 = arith.constant 0 : index
    %12 = vector.load %arg3[%c1, %c0_11, %c0_12] : memref<3x32x32xf32, #tpu.memory_space<vmem>>, vector<1x32x32xf32>
    %13 = vector.shape_cast %12 : vector<1x32x32xf32> to vector<32x32xf32>
    %cst_13 = arith.constant dense<0.000000e+00> : vector<2x32xf32>
    %14 = tpu.matmul %11, %13, %cst_13 {dimension_numbers = #tpu.dot_dimension_numbers<[1], [1], [0], [0], [0, 0, 1, 0], [], []>} : vector<2x32xf32>, vector<32x32xf32>, vector<2x32xf32> -> vector<2x32xf32>
    %c1_14 = arith.constant 1 : index
    %c0_15 = arith.constant 0 : index
    %c0_16 = arith.constant 0 : index
    %15 = vector.load %arg4[%c1_14, %c0_15, %c0_16] : memref<3x1x32xf32, #tpu.memory_space<vmem>>, vector<1x1x32xf32>
    %16 = vector.shape_cast %15 : vector<1x1x32xf32> to vector<1x32xf32>
    %17 = vector.broadcast %16 : vector<1x32xf32> to vector<2x32xf32>
    %18 = arith.addf %14, %17 : vector<2x32xf32>
    %19 = vector.shape_cast %18 : vector<2x32xf32> to vector<2x1x32xf32>
    %c0_17 = arith.constant 0 : index
    %c0_18 = arith.constant 0 : index
    %c0_19 = arith.constant 0 : index
    %20 = vector.load %arg2[%c0_17, %c0_18, %c0_19] : memref<2x1x32xf32, #tpu.memory_space<vmem>>, vector<2x1x32xf32>
    %21 = vector.shape_cast %20 : vector<2x1x32xf32> to vector<2x32xf32>
    %c2 = arith.constant 2 : index
    %c0_20 = arith.constant 0 : index
    %c0_21 = arith.constant 0 : index
    %22 = vector.load %arg3[%c2, %c0_20, %c0_21] : memref<3x32x32xf32, #tpu.memory_space<vmem>>, vector<1x32x32xf32>
    %23 = vector.shape_cast %22 : vector<1x32x32xf32> to vector<32x32xf32>
    %cst_22 = arith.constant dense<0.000000e+00> : vector<2x32xf32>
    %24 = tpu.matmul %21, %23, %cst_22 {dimension_numbers = #tpu.dot_dimension_numbers<[1], [1], [0], [0], [0, 0, 1, 0], [], []>} : vector<2x32xf32>, vector<32x32xf32>, vector<2x32xf32> -> vector<2x32xf32>
    %c2_23 = arith.constant 2 : index
    %c0_24 = arith.constant 0 : index
    %c0_25 = arith.constant 0 : index
    %25 = vector.load %arg4[%c2_23, %c0_24, %c0_25] : memref<3x1x32xf32, #tpu.memory_space<vmem>>, vector<1x1x32xf32>
    %26 = vector.shape_cast %25 : vector<1x1x32xf32> to vector<1x32xf32>
    %27 = vector.broadcast %26 : vector<1x32xf32> to vector<2x32xf32>
    %28 = arith.addf %24, %27 : vector<2x32xf32>
    %29 = vector.shape_cast %28 : vector<2x32xf32> to vector<2x1x32xf32>
    %30 = arith.mulf %9, %19 : vector<2x1x32xf32>
    %cst_26 = arith.constant dense<0.000000e+00> : vector<2x1xf32>
    %31 = vector.multi_reduction <add>, %30, %cst_26 [2] : vector<2x1x32xf32> to vector<2x1xf32>
    %32 = vector.shape_cast %31 : vector<2x1xf32> to vector<2x1x1xf32>
    %cst_27 = arith.constant 0.176776692 : f32
    %33 = vector.broadcast %cst_27 : f32 to vector<2x1x1xf32>
    %34 = arith.mulf %32, %33 : vector<2x1x1xf32>
    %cst_28 = arith.constant dense<0xFF800000> : vector<2x1xf32>
    %35 = vector.multi_reduction <maximumf>, %34, %cst_28 [2] : vector<2x1x1xf32> to vector<2x1xf32>
    %36 = vector.shape_cast %35 : vector<2x1xf32> to vector<2x1x1xf32>
    %37 = arith.subf %34, %36 : vector<2x1x1xf32>
    %38 = math.exp %37 : vector<2x1x1xf32>
    %cst_29 = arith.constant dense<0.000000e+00> : vector<2x1xf32>
    %39 = vector.multi_reduction <add>, %38, %cst_29 [2] : vector<2x1x1xf32> to vector<2x1xf32>
    %40 = vector.shape_cast %39 : vector<2x1xf32> to vector<2x1x1xf32>
    %41 = arith.divf %38, %40 : vector<2x1x1xf32>
    %42 = vector.broadcast %41 : vector<2x1x1xf32> to vector<2x1x32xf32>
    %43 = arith.mulf %42, %29 : vector<2x1x32xf32>
    %c0_30 = arith.constant 0 : index
    %c0_31 = arith.constant 0 : index
    %c0_32 = arith.constant 0 : index
    %44 = vector.load %arg5[%c0_30, %c0_31, %c0_32] : memref<2x1x32xf32, #tpu.memory_space<vmem>>, vector<2x1x32xf32>
    tpu.vector_store %arg5[%c0_30, %c0_31, %c0_32], %43 {strides = array<i32>} : memref<2x1x32xf32, #tpu.memory_space<vmem>>, vector<2x1x32xf32>,
    %45 = vector.shape_cast %41 : vector<2x1x1xf32> to vector<2x1x1x1xf32>
    %c0_33 = arith.constant 0 : index
    %c0_34 = arith.constant 0 : index
    %c0_35 = arith.constant 0 : index
    %c0_36 = arith.constant 0 : index
    %46 = vector.load %arg6[%c0_33, %c0_34, %c0_35, %c0_36] : memref<2x1x1x1xf32, #tpu.memory_space<vmem>>, vector<2x1x1x1xf32>
    tpu.vector_store %arg6[%c0_33, %c0_34, %c0_35, %c0_36], %45 {strides = array<i32>} : memref<2x1x1x1xf32, #tpu.memory_space<vmem>>, vector<2x1x1x1xf32>,
    return
  }
}

</mosaic_0001>

<bundles_post_ra>
// kernel: tpu_custom_call.1
= control target key start
LH: loop header
LB: loop body
LE: loop exit
PB: predicated region body
PF: predicated region fallthrough
CT: control target
= control target key end

     0   :  { %12 = vsyncpa [#allocation3], 0  ;;  %s868_s0 = inlined_call_operand.hbm [shape: f32[2,1,32], index: 0, kind: input, shape index: {}]   ;;  %s869_s1 = inlined_call_operand.vmem [shape: f32[2,1,32], index: 1, kind: input, shape index: {}]   ;;  %s870_s2 = inlined_call_operand.vmem [shape: f32[2,1,32], index: 2, kind: input, shape index: {}]   ;;  %s871_s3 = inlined_call_operand.hbm [shape: f32[3,32,32], index: 3, kind: input, shape index: {}]   ;;  %s872_s4 = inlined_call_operand.vmem [shape: f32[3,1,32], index: 4, kind: input, shape index: {}]   ;;  %s873_s5 = inlined_call_operand.hbm [shape: f32[2,1,32], index: 5, kind: output, shape index: {0}]   ;;  %s874_s6 = inlined_call_operand.vmem [shape: f32[2,1,1,1], index: 6, kind: output, shape index: {1}]  }
   0x1   :  { %13 = vsyncpa [#allocation6], 0 }
   0x2   :  { %14 = vsyncpa [#allocation4], 0  ;;  %s708_s21 = smov [#allocation2]   ;;  %s636_s25 = scalar_lea.hbm %s868_s0, 32 }
   0x3   :  { %s20_s22 = sshll.u32 %s708_s21, 4  ;;  %p637_p0 = scmp.ne.s32.totalorder %s868_s0, %s636_s25  ;;  %s21_s22 = int_to_ptr.vmem [resolvable:$true] %s20_s22 }
   0x4   :  { %p640_p1 = scmp.lt.u32.totalorder %s636_s25, %s868_s0 }
   0x6   :  { %p642_p2 = pnand %p640_p1, %p637_p0 }
   0x8   :  { %645 = shalt.err (!%p642_p2)
}
   0x9   :  { %s646_s30 = scalar_lea.vmem %s21_s22, 32  ;;  %p651_p4 = scmp.lt.s32.totalorder %s21_s22, %s21_s22 }
   0xa   :  { %p647_p3 = scmp.ne.s32.totalorder %s21_s22, %s646_s30  ;;  %p652_p5 = scmp.lt.s32.totalorder %s646_s30, %s646_s30 }
   0xc   :  { %p653_p6 = por %p652_p5, %p651_p4 }
   0xe   :  { %p654_p7 = pnand %p653_p6, %p647_p3 }
  0x10   :  { %657 = shalt.err (!%p654_p7)
}
  0x11   :  { %s709_s7 = smov 16   ;;  %s710_s8 = smov 1  }
  0x12   :  { %26 = dma.hbm_to_vmem [thread:$0]  %s868_s0, 32, %s21_s22, [#allocation3], %s709_s7, %s709_s7, %s710_s8  }
  0x13   :  { %s711_s11 = smov [#allocation5]   ;;  %s658_s15 = scalar_lea.hbm %s871_s3, 1536 }
  0x14   :  { %s36_s12 = sshll.u32 %s711_s11, 4  ;;  %p659_p8 = scmp.ne.s32.totalorder %s871_s3, %s658_s15  ;;  %s37_s12 = int_to_ptr.vmem [resolvable:$true] %s36_s12 }
  0x15   :  { %p662_p9 = scmp.lt.u32.totalorder %s658_s15, %s871_s3 }
  0x17   :  { %p664_p10 = pnand %p662_p9, %p659_p8 }
  0x19   :  { %667 = shalt.err (!%p664_p10)
}
  0x1a   :  { %s668_s20 = scalar_lea.vmem %s37_s12, 1536  ;;  %p673_p12 = scmp.lt.s32.totalorder %s37_s12, %s37_s12 }
  0x1b   :  { %p669_p11 = scmp.ne.s32.totalorder %s37_s12, %s668_s20  ;;  %p674_p13 = scmp.lt.s32.totalorder %s668_s20, %s668_s20 }
  0x1d   :  { %p675_p0 = por %p674_p13, %p673_p12 }
  0x1f   :  { %p676_p1 = pnand %p675_p0, %p669_p11 }
  0x21   :  { %679 = shalt.err (!%p676_p1)
}
  0x22   :  { %s712_s0 = smov 128   ;;  %s713_s21 = smov 8  }
  0x23   :  { %42 = dma.hbm_to_vmem [thread:$0]  %s871_s3, 1536, %s37_s12, [#allocation6], %s712_s0, %s712_s0, %s713_s21  }
  0x24   :  { %702 = dma.done.wait [#allocation3], 32  }
  0x25   :  { %703 = vsyncadd [#allocation3], 4294967264 }
  0x26   :  { %704 = dma.done.wait [#allocation6], 1536  }
  0x27   :  { %705 = vsyncadd [#allocation6], 4294965760  ;;  %v714_v0 = vmov 0.0|0.0   ;;  %vm715_vm0 = vmmov 0   ;;  %v716_v1 = vmov 0.0   ;;  %vm81_vm1 = vcmask 261120  }
  0x28   :  { %593 = vmatprep.subr.bf16.mxu0 %v714_v0  ;;  %601 = vmatprep.subr.bf16.mxu1 %v714_v0  ;;  %v717_v2 = vmov 1966171168   ;;  %v70_v4 = vlaneseq  ;;  %vm785_vm2 = vmpackc.low %vm81_vm1, %vm81_vm1  ;;  %v53_v6 = vld [vmem:[#allocation5] sm:$0xff]  ;;  %v54_v7 = vld [vmem:[#allocation5 + $0x8] sm:$0xff]  ;;  %vm475_vm3 = vcmask 253952   ;;  %vm500_vm4 = vcmask 0  }
  0x29   :  { %568 = vmatprep.mubr.msk.f32.mxu0 %vm715_vm0, %v716_v1  ;;  %579 = vmatprep.mubr.msk.f32.mxu1 %vm715_vm0, %v716_v1  ;;  %v68_v3 = vunpack.c.l.s4 %v717_v2  ;;  %v194_v8 = vld [vmem:[#allocation5 + $0x20] sm:$0xff]  ;;  %v594_v9 = vpack.c.bf16 %v54_v7, %v53_v6  ;;  %v195_v10 = vld [vmem:[#allocation5 + $0x28] sm:$0xff]  ;;  %v55_v14 = vld [vmem:[#allocation5 + $0x10] sm:$0xff] }
  0x2a   :  { %v602_v11 = vpack.c.bf16 %v195_v10, %v194_v8  ;;  %v71_v13 = vshrl.u32 %v70_v4, 7  ;;  %v51_v15 = vld [vmem:[#allocation2] sm:$0x1]  ;;  %v52_v16 = vld [vmem:[#allocation2 + $0x1] sm:$0x1]  ;;  %v196_v20 = vld [vmem:[#allocation5 + $0x30] sm:$0xff] }
  0x2b   :  { %v69_v12 = vunpack.c.0.s8 %v68_v3  ;;  %596 = vmatpush3.bf16.xpose.msk.msra.mxu0 %vm785_vm2, %v594_v9  ;;  %v56_v17 = vld [vmem:[#allocation5 + $0x18] sm:$0xff]  ;;  %v66_v22 = vcombine.low %v51_v15, %v52_v16  ;;  %v335_v29 = vld [vmem:[#allocation5 + $0x40] sm:$0xff]  ;;  %v336_v30 = vld [vmem:[#allocation5 + $0x48] sm:$0xff] }
  0x2c   :  { %604 = vmatpush3.bf16.xpose.msk.msra.mxu1 %vm785_vm2, %v602_v11  ;;  %597 = vmatprep.subr.bf16.mxu0 %v714_v0  ;;  %v191_v18 = vld [vmem:[%s869_s1] sm:$0x1]  ;;  %v192_v19 = vld [vmem:[%s869_s1 + $0x1] sm:$0x1]  ;;  %v598_v24 = vpack.c.bf16 %v56_v17, %v55_v14  ;;  %v610_v33 = vpack.c.bf16 %v336_v30, %v335_v29  ;;  %v337_v36 = vld [vmem:[#allocation5 + $0x50] sm:$0xff] }
  0x2d   :  { %605 = vmatprep.subr.bf16.mxu1 %v714_v0  ;;  %v197_v21 = vld [vmem:[#allocation5 + $0x38] sm:$0xff]  ;;  %v799_v23 = vsub.s32 %v69_v12, %v71_v13  ;;  %v208_v25 = vcombine.low %v191_v18, %v192_v19  ;;  %v539_v8 = vld [vmem:[%s872_s4 + $0x2] ss:$0 sm:$0xff] }
  0x2e   :  { %v606_v26 = vpack.c.bf16 %v197_v21, %v196_v20  ;;  %v332_v34 = vld [vmem:[%s870_s2] sm:$0x1]  ;;  %v333_v35 = vld [vmem:[%s870_s2 + $0x1] sm:$0x1] }
  0x2f   :  { %v73_v27 = vrot.slane %v66_v22, %v799_v23  ;;  %v215_v28 = vrot.slane %v208_v25, %v799_v23  ;;  %v338_v37 = vld [vmem:[#allocation5 + $0x58] sm:$0xff]  ;;  %v349_v38 = vcombine.low %v332_v34, %v333_v35 }
  0x30   :  { %v614_v39 = vpack.c.bf16 %v338_v37, %v337_v36  ;;  %v525_v42 = vld [vmem:[%s872_s4] ss:$0 sm:$0xff]  ;;  %v532_v43 = vld [vmem:[%s872_s4 + $0x1] ss:$0 sm:$0xff]  ;;  %s718_s4 = smov [#allocation7]  }
  0x31   :  { %v80_v31 = vrot.slane %v73_v27, %v799_v23  ;;  %v222_v32 = vrot.slane %v215_v28, %v799_v23  ;;  %v356_v40 = vrot.slane %v349_v38, %v799_v23  ;;  %s508_s15 = sshll.u32 %s718_s4, 4  ;;  %s509_s15 = int_to_ptr.vmem [resolvable:$true] %s508_s15 }
  0x32   :  { %s680_s18 = scalar_lea.vmem %s509_s15, 32  ;;  %p685_p3 = scmp.lt.s32.totalorder %s509_s15, %s509_s15 }
  0x33   :  { %600 = vmatpush3.bf16.xpose.msk.msra.mxu0 %vm785_vm2, %v598_v24  ;;  %v363_v41 = vrot.slane %v356_v40, %v799_v23  ;;  %p681_p2 = scmp.ne.s32.totalorder %s509_s15, %s680_s18  ;;  %p686_p4 = scmp.lt.s32.totalorder %s680_s18, %s680_s18 }
  0x34   :  { %608 = vmatpush3.bf16.xpose.msk.msra.mxu1 %vm785_vm2, %v606_v26  ;;  %609 = vmatprep.subr.bf16.mxu0 %v714_v0 }
  0x35   :  { %p687_p5 = por %p686_p4, %p685_p3 }
  0x37   :  { %p688_p6 = pnand %p687_p5, %p681_p2 }
  0x3a   :  { %569 = vmatmul.mubr.msk.f32.vlgmr.msra.gmra.mrb[0].mxu0 %vm81_vm1, %v80_v31 }
  0x3b   :  { %580 = vmatmul.mubr.msk.f32.vlgmr.msra.gmra.mrb[0].mxu1 %vm81_vm1, %v222_v32  ;;  %612 = vmatpush3.bf16.xpose.msk.msra.mxu0 %vm785_vm2, %v610_v33 }
  0x3c   :  { %613 = vmatprep.subr.bf16.mxu0 %v714_v0  ;;  %590 = vmatprep.mubr.msk.f32.mxu0 %vm715_vm0, %v716_v1 }
  0x43   :  { %616 = vmatpush3.bf16.xpose.msk.msra.mxu0 %vm785_vm2, %v614_v39 }
  0x4a   :  { %591 = vmatmul.mubr.msk.f32.vlgmr.msra.gmra.mrb[2].mxu0 %vm81_vm1, %v363_v41 }
 0x10d   :  { %v162_v44 = vpop.f32.mrb[0].mxu0 }
 0x10e   :  { %v163_v45 = vadd.f32 %v525_v42, %v162_v44  ;;  %v303_v46 = vpop.f32.mrb[0].mxu1  ;;  %v570_v47 = vpop.f32.mrb[1].mxu0 }
 0x10f   :  { %v304_v48 = vadd.f32 %v532_v43, %v303_v46  ;;  %v581_v49 = vpop.f32.mrb[1].mxu1 }
 0x110   :  { %v173_v50 = vrot.slane %v163_v45, %v799_v23 }
 0x111   :  { %v314_v51 = vrot.slane %v304_v48, %v799_v23 }
 0x112   :  { %v174_v52 = vcombine.high %v173_v50, %v173_v50  ;;  %v181_v53 = vrot.slane %v173_v50, %v799_v23 }
 0x113   :  { %v315_v54 = vcombine.high %v314_v51, %v314_v51  ;;  %v322_v55 = vrot.slane %v314_v51, %v799_v23 }
 0x114   :  { %v188_v56 = vrot.slane %v174_v52, %v799_v23 }
 0x115   :  { %v473_v57 = vmul.f32 %v322_v55, %v181_v53  ;;  %v329_v58 = vrot.slane %v315_v54, %v799_v23 }
 0x117   :  { %v476_v59 = vsel %vm475_vm3, %v473_v57, 0.0  ;;  %v474_v60 = vmul.f32 %v329_v58, %v188_v56 }
 0x118   :  { %477 = vadd.xlane.f32.xlu0 %v476_v59 }
 0x119   :  { %v479_v61 = vsel %vm475_vm3, %v474_v60, 0.0 }
 0x11c   :  { %480 = vadd.xlane.f32.xlu0 %v479_v61 }
 0x11d   :  { %v444_v62 = vpop.f32.mrb[2].mxu0 }
 0x11e   :  { %v592_v63 = vpop.f32.mrb[3].mxu0  ;;  %v445_v10 = vadd.f32 %v539_v8, %v444_v62 }
 0x120   :  { %v455_v12 = vrot.slane %v445_v10, %v799_v23 }
 0x122   :  { %v456_v13 = vcombine.high %v455_v12, %v455_v12  ;;  %v463_v14 = vrot.slane %v455_v12, %v799_v23 }
 0x124   :  { %v470_v17 = vrot.slane %v456_v13, %v799_v23 }
 0x1a5   :  { %v478_v0 = vpop.xlane.xlu0 %477 }
 0x1a6   :  { %v482_v1 = vmul.f32 0.17677669, %v478_v0 }
 0x1a8   :  { %v484_v2 = vsub.f32 %v482_v1, %v482_v1 }
 0x1a9   :  { %v481_v3 = vpop.xlane.xlu0 %480 }
 0x1aa   :  { %v486_v4 = vmul.f32 1.442695, %v484_v2  ;;  %v483_v5 = vmul.f32 0.17677669, %v481_v3 }
 0x1ac   :  { %628 = vpow2.f32 %v486_v4  ;;  %v485_v6 = vsub.f32 %v483_v5, %v483_v5 }
 0x1ae   :  { %v488_v7 = vmul.f32 1.442695, %v485_v6 }
 0x1b0   :  { %630 = vpow2.f32 %v488_v7 }
 0x1b6   :  { %v629_v9 = vpop.eup %628 }
 0x1b7   :  { %632 = vrcp.f32 %v629_v9 }
 0x1ba   :  { %v631_v11 = vpop.eup %630 }
 0x1bb   :  { %634 = vrcp.f32 %v631_v11 }
 0x1c1   :  { %v633_v15 = vpop.eup %632 }
 0x1c2   :  { %v493_v16 = vmul.f32 %v633_v15, %v629_v9 }
 0x1c4   :  { %v496_v18 = vmul.f32 %v493_v16, %v463_v14  ;;  %501 = vst.msk [vmem:[%s874_s6] sm:$0x1] %vm500_vm4, %v493_v16 }
 0x1c5   :  { %v635_v19 = vpop.eup %634 }
 0x1c6   :  { %498 = vst.msk [vmem:[#allocation7] sm:$0x1] %vm475_vm3, %v496_v18  ;;  %v495_v20 = vmul.f32 %v635_v19, %v631_v11 }
 0x1c8   :  { %v497_v21 = vmul.f32 %v495_v20, %v470_v17  ;;  %502 = vst.msk [vmem:[%s874_s6 + $0x1] sm:$0x1] %vm500_vm4, %v495_v20 }
 0x1ca   :  { %499 = vst.msk [vmem:[#allocation7 + $0x1] sm:$0x1] %vm475_vm3, %v497_v21 }
 0x1cb   :  { %691 = shalt.err (!%p688_p6)
}
 0x1cc   :  { %s692_s0 = scalar_lea.hbm %s873_s5, 32 }
 0x1cd   :  { %p693_p7 = scmp.ne.s32.totalorder %s873_s5, %s692_s0  ;;  %p696_p8 = scmp.lt.u32.totalorder %s692_s0, %s873_s5 }
 0x1cf   :  { %p698_p9 = pnand %p696_p8, %p693_p7 }
 0x1d1   :  { %701 = shalt.err (!%p698_p9)
}
 0x1d2   :  { %514 = dma.vmem_to_hbm [thread:$0]  %s509_s15, 32, %s873_s5, [#allocation4], %s709_s7, %s709_s7, %s710_s8  }
 0x1d3   :  { %706 = dma.done.wait [#allocation4], 32  }
 0x1d4   :  { %707 = vsyncadd [#allocation4], 4294967264 }
 0x1d5   :  { %522 = vsyncpa [#allocation3], 1 }
 0x1d6   :  { %523 = vsyncpa [#allocation6], 1 }
 0x1d7   :  { %524 = vsyncpa [#allocation4], 1 }

</bundles_post_ra>
